<compile_context>
chip_gen: v7x
topology: tpu7x:2x2x1
jax: 0.10.0
libtpu: 0.0.40
codegen_flags: <defaults>
</compile_context>

<pallas_src>
import functools

import jax
import jax.numpy as jnp
from jax import lax
from jax.experimental import pallas as pl
from jax.experimental.pallas import tpu as pltpu


# Sentinel depth substituted for invalid pixels: (c - 1e6)^2 ~ 1e12, finite in
# f32 and far larger than any real squared depth distance (depths << 1e3), so
# sentinel pixels never win a min against a genuine distance.
_SENTINEL = 1.0e6
_INIT_MIN = 1.0e12
_VALID_THRESHOLD = 0.001


def _chamfer_kernel(c_ref, t_ref, out_ref,
                    cbc_ref, minx_ref, sumy_ref, cnt_ref,
                    *, p_real, num_groups, m_real, ragged):
    """Grid = (batch, pixel-chunk). Streams tm pixels/step in 128-lane groups."""
    mi = pl.program_id(1)
    last = pl.num_programs(1) - 1
    p_pad = minx_ref.shape[0]
    tm = num_groups * 128

    # -------- per-batch init: lane-broadcast centers once, reset accumulators.
    @pl.when(mi == 0)
    def _():
        cbc_ref[...] = jnp.broadcast_to(
            c_ref[0].astype(jnp.float32), (p_pad, 128))
        minx_ref[...] = jnp.full((p_pad, 128), _INIT_MIN, jnp.float32)
        sumy_ref[...] = jnp.zeros((1, 128), jnp.float32)
        cnt_ref[...] = jnp.zeros((1, 128), jnp.float32)

    c_b = cbc_ref[...]                                   # (p_pad, 128)
    lane = lax.broadcasted_iota(jnp.int32, (1, 128), 1)  # hoisted out of loop
    chunk_base = mi * tm

    def group(g, carry):
        minx, sumy, cnt = carry
        start = g * 128
        if not isinstance(start, int):
            start = pl.multiple_of(start, 128)
        t_g = t_ref[0, :, pl.ds(start, 128)].astype(jnp.float32)   # (1, 128)
        valid = t_g >= jnp.float32(_VALID_THRESHOLD)
        if ragged:
            # Mask lanes past the true pixel count (last chunk reads OOB data
            # with undefined values; they are neutralized here).
            gidx = chunk_base + start + lane
            valid = jnp.logical_and(valid, gidx < m_real)
        t_m = jnp.where(valid, t_g, jnp.float32(_SENTINEL))
        diff = c_b - t_m                                  # (p_pad, 128)
        d = diff * diff                                   # stays vreg-resident
        minx = jnp.minimum(minx, d)                       # VPU, lane-partial
        d_y = jnp.min(d, axis=0, keepdims=True)           # (1,128) sublane min
        sumy = sumy + jnp.where(valid, d_y, 0.0)
        cnt = cnt + valid.astype(jnp.float32)
        return minx, sumy, cnt

    init = (minx_ref[...], sumy_ref[...], cnt_ref[...])
    if num_groups <= 8:
        carry = init
        for g in range(num_groups):
            carry = group(g, carry)
        minx, sumy, cnt = carry
    else:
        minx, sumy, cnt = lax.fori_loop(0, num_groups, group, init, unroll=8)

    # Scratch read-modify-write once per chunk (not per group).
    minx_ref[...] = minx
    sumy_ref[...] = sumy
    cnt_ref[...] = cnt

    # -------- per-batch finalize: the only cross-lane (XLU) reductions.
    @pl.when(mi == last)
    def _():
        mins = jnp.min(minx_ref[...], axis=1, keepdims=True)          # (p_pad,1)
        row_ok = lax.broadcasted_iota(jnp.int32, (p_pad, 1), 0) < p_real
        cham_x = (jnp.sum(jnp.where(row_ok, mins, 0.0), axis=0, keepdims=True)
                  / jnp.float32(p_real))                               # (1,1)
        sy = jnp.sum(sumy_ref[...], axis=1, keepdims=True)             # (1,1)
        ct = jnp.sum(cnt_ref[...], axis=1, keepdims=True)              # (1,1)
        # TODO(synk): a batch element with zero valid pixels diverges from
        # pytorch3d (cham_x inflates to the sentinel magnitude, cham_y -> 0).
        cham_y = sy / jnp.maximum(ct, 1.0)
        out_ref[0] = (cham_x + cham_y).astype(out_ref.dtype)


def bins_chamfer_loss(bins, target_depth_maps, *, tm_cap=32768):
    """Pallas implementation of BinsChamferLoss.forward."""
    bins = bins.astype(jnp.float32)
    bin_centers = 0.5 * (bins[:, 1:] + bins[:, :-1])                  # (N, P)
    n, p = bin_centers.shape

    # Targets stay in their native dtype (cast to f32 in-kernel) and are NOT
    # padded: the ragged last chunk is masked in-kernel, so the wrapper makes
    # no extra HBM read/write passes over the (N, M) depth maps.
    t3 = target_depth_maps.reshape(n, 1, -1)                          # (N,1,M)
    m = t3.shape[-1]

    # Pad bin-center rows to a sublane multiple (edge-replicated; excluded from
    # the cham_x sum via the row mask in the finalize block).
    p_pad = ((p + 7) // 8) * 8
    if p_pad != p:
        bin_centers = jnp.pad(bin_centers, ((0, 0), (0, p_pad - p)), mode="edge")
    c3 = bin_centers.reshape(n, p_pad, 1)                 # sublane-major centers

    # Generation-aware sizing (v7x: 64 MiB VMEM/TC; v5e/v6e: 128 MiB).
    try:
        vmem_cap = int(pltpu.get_tpu_info().vmem_capacity_bytes)
    except Exception:  # not queryable -> conservative v7x-sized budget
        vmem_cap = 64 * 1024 * 1024
    itemsize = max(t3.dtype.itemsize, 1)
    m_lanes = ((m + 127) // 128) * 128
    budget = max(16 * 1024 * 1024, int(0.45 * vmem_cap))
    tm_budget = max(128, (budget // (4 * max(itemsize, 4)) // 128) * 128)
    tm = int(max(128, (min(tm_cap, m_lanes, tm_budget) // 128) * 128))
    n_chunks = -(-m // tm)
    num_groups = tm // 128
    ragged = (m % tm) != 0

    kernel = functools.partial(_chamfer_kernel, p_real=p, num_groups=num_groups,
                               m_real=m, ragged=ragged)

    # Triple-buffer the pixel stream once there are enough chunks to pipeline
    # (hides DMA jitter on low-HBM-BW parts such as v5e).
    t_index = lambda b, mi: (b, 0, mi)
    if n_chunks > 2:
        n_bufs = 3
        t_spec = pl.BlockSpec((1, 1, tm), t_index, pipeline_mode=pl.Buffered(3))
    else:
        n_bufs = 2
        t_spec = pl.BlockSpec((1, 1, tm), t_index)

    needed = n_bufs * tm * max(itemsize, 4) + 6 * p_pad * 128 * 4 + (1 << 20)
    vmem_limit = int(min(max(needed, 32 * 1024 * 1024), int(0.75 * vmem_cap)))

    out = pl.pallas_call(
        kernel,
        out_shape=jax.ShapeDtypeStruct((n, 1, 1), jnp.float32),
        grid_spec=pltpu.PrefetchScalarGridSpec(
            num_scalar_prefetch=0,
            grid=(n, n_chunks),                       # reduction (pixel) axis last
            in_specs=[
                pl.BlockSpec((1, p_pad, 1), lambda b, mi: (b, 0, 0)),
                t_spec,
            ],
            out_specs=pl.BlockSpec((1, 1, 1), lambda b, mi: (b, 0, 0)),
            scratch_shapes=[
                pltpu.VMEM((p_pad, 128), jnp.float32),  # lane-broadcast centers
                pltpu.VMEM((p_pad, 128), jnp.float32),  # lane-partial min_j d[i,j]
                pltpu.VMEM((1, 128), jnp.float32),      # lane-partial sum_j min_i d
                pltpu.VMEM((1, 128), jnp.float32),      # lane-partial valid count
            ],
        ),
        compiler_params=pltpu.CompilerParams(
            dimension_semantics=("parallel", "arbitrary"),
            vmem_limit_bytes=vmem_limit,
        ),
        cost_estimate=pl.CostEstimate(
            flops=5 * n * p_pad * m_lanes,
            transcendentals=0,
            bytes_accessed=n * m * itemsize + n * p_pad * 4 + n * 4,
        ),
    )(c3, t3)

    return jnp.mean(out.reshape(n))


def _reference_loss(bins, target_depth_maps):
    """Pure-JAX reference replicating pytorch3d chamfer_distance defaults."""
    bins = bins.astype(jnp.float32)
    bin_centers = 0.5 * (bins[:, 1:] + bins[:, :-1])                  # (N, P)
    n, p = bin_centers.shape
    tgt = target_depth_maps.astype(jnp.float32).reshape(n, -1)        # (N, M)
    valid = tgt >= 0.001
    d = (bin_centers[:, :, None] - tgt[:, None, :]) ** 2              # (N, P, M)
    big = 1e30
    cham_x = jnp.sum(jnp.min(jnp.where(valid[:, None, :], d, big), axis=2), axis=1) / p
    d_y = jnp.min(d, axis=1)                                          # (N, M)
    lengths = jnp.sum(valid, axis=1).astype(jnp.float32)
    cham_y = jnp.sum(jnp.where(valid, d_y, 0.0), axis=1) / jnp.maximum(lengths, 1.0)
    return jnp.mean(cham_x + cham_y)


if __name__ == "__main__":
    key = jax.random.PRNGKey(0)
    k_bins, k_tgt, k_mask = jax.random.split(key, 3)

    N, P_BINS = 2, 17                 # -> 16 bin centers per batch
    C, H, W = 1, 16, 16               # target depth maps, NCHW (M = 256)

    # Monotone positive bin edges (like adaptive-bins output).
    bins = jnp.cumsum(
        jax.random.uniform(k_bins, (N, P_BINS), jnp.float32, 0.1, 1.0), axis=1
    )

    # Depth maps with some invalid (< 0.001) pixels to exercise the mask.
    depth = jax.random.uniform(k_tgt, (N, C, H, W), jnp.float32, 0.0, 10.0)
    keep = jax.random.bernoulli(k_mask, 0.7, (N, C, H, W))
    target_depth_maps = jnp.where(keep, depth, 0.0)

    loss = jax.block_until_ready(bins_chamfer_loss(bins, target_depth_maps))
    ref = jax.block_until_ready(_reference_loss(bins, target_depth_maps))

    assert jnp.isfinite(loss), "non-finite loss"
    assert jnp.allclose(loss, ref, rtol=1e-5, atol=1e-5), (loss, ref)
    print("KERNEL_OK")
</pallas_src>

<mosaic_0001>
module attributes {stable_mosaic.version = 11 : i64} {
  func.func @_chamfer_kernel(%arg0: i32, %arg1: i32, %arg2: memref<1x16x1xf32, #tpu.memory_space<vmem>>, %arg3: memref<1x1x256xf32, #tpu.memory_space<vmem>>, %arg4: memref<1x1x1xf32, #tpu.memory_space<vmem>>, %arg5: memref<16x128xf32, #tpu.memory_space<vmem>>, %arg6: memref<16x128xf32, #tpu.memory_space<vmem>>, %arg7: memref<1x128xf32, #tpu.memory_space<vmem>>, %arg8: memref<1x128xf32, #tpu.memory_space<vmem>>) attributes {dimension_semantics = [#tpu.dimension_semantics<parallel>, #tpu.dimension_semantics<arbitrary>], iteration_bounds = array<i64: 2, 1>, scalar_prefetch = 0 : i64, scratch_operands = 4 : i64, tpu.core_type = #tpu.core_type<tc>, window_params = [{transform_indices = @transform_0, window_bounds = array<i64: 1, 16, 1>}, {transform_indices = @transform_1, window_bounds = array<i64: 1, 1, 256>}, {transform_indices = @transform_2, window_bounds = array<i64: 1, 1, 1>}]} {
    %c0_i32 = arith.constant 0 : i32
    %0 = arith.cmpi eq, %arg1, %c0_i32 : i32
    %1 = arith.extui %0 : i1 to i32
    %c0_i32_0 = arith.constant 0 : i32
    %2 = arith.cmpi ne, %1, %c0_i32_0 : i32
    scf.if %2 {
      %c0_28 = arith.constant 0 : index
      %c0_29 = arith.constant 0 : index
      %c0_30 = arith.constant 0 : index
      %49 = vector.load %arg2[%c0_28, %c0_29, %c0_30] : memref<1x16x1xf32, #tpu.memory_space<vmem>>, vector<1x16x1xf32>
      %50 = vector.shape_cast %49 : vector<1x16x1xf32> to vector<16x1xf32>
      %51 = vector.shape_cast %50 : vector<16x1xf32> to vector<16x1xf32>
      %52 = vector.broadcast %51 : vector<16x1xf32> to vector<16x128xf32>
      %c0_31 = arith.constant 0 : index
      %c0_32 = arith.constant 0 : index
      %53 = vector.load %arg5[%c0_31, %c0_32] : memref<16x128xf32, #tpu.memory_space<vmem>>, vector<16x128xf32>
      tpu.vector_store %arg5[%c0_31, %c0_32], %52 {strides = array<i32>} : memref<16x128xf32, #tpu.memory_space<vmem>>, vector<16x128xf32>,
      %cst_33 = arith.constant 9.99999995E+11 : f32
      %54 = vector.broadcast %cst_33 : f32 to vector<16x128xf32>
      %c0_34 = arith.constant 0 : index
      %c0_35 = arith.constant 0 : index
      %55 = vector.load %arg6[%c0_34, %c0_35] : memref<16x128xf32, #tpu.memory_space<vmem>>, vector<16x128xf32>
      tpu.vector_store %arg6[%c0_34, %c0_35], %54 {strides = array<i32>} : memref<16x128xf32, #tpu.memory_space<vmem>>, vector<16x128xf32>,
      %cst_36 = arith.constant 0.000000e+00 : f32
      %56 = vector.broadcast %cst_36 : f32 to vector<1x128xf32>
      %c0_37 = arith.constant 0 : index
      %c0_38 = arith.constant 0 : index
      %57 = vector.load %arg7[%c0_37, %c0_38] : memref<1x128xf32, #tpu.memory_space<vmem>>, vector<1x128xf32>
      tpu.vector_store %arg7[%c0_37, %c0_38], %56 {strides = array<i32>} : memref<1x128xf32, #tpu.memory_space<vmem>>, vector<1x128xf32>,
      %cst_39 = arith.constant 0.000000e+00 : f32
      %58 = vector.broadcast %cst_39 : f32 to vector<1x128xf32>
      %c0_40 = arith.constant 0 : index
      %c0_41 = arith.constant 0 : index
      %59 = vector.load %arg8[%c0_40, %c0_41] : memref<1x128xf32, #tpu.memory_space<vmem>>, vector<1x128xf32>
      tpu.vector_store %arg8[%c0_40, %c0_41], %58 {strides = array<i32>} : memref<1x128xf32, #tpu.memory_space<vmem>>, vector<1x128xf32>,
    } else {
    }
    %c0 = arith.constant 0 : index
    %c0_1 = arith.constant 0 : index
    %3 = vector.load %arg5[%c0, %c0_1] : memref<16x128xf32, #tpu.memory_space<vmem>>, vector<16x128xf32>
    %c0_2 = arith.constant 0 : index
    %c0_3 = arith.constant 0 : index
    %4 = vector.load %arg6[%c0_2, %c0_3] : memref<16x128xf32, #tpu.memory_space<vmem>>, vector<16x128xf32>
    %c0_4 = arith.constant 0 : index
    %c0_5 = arith.constant 0 : index
    %5 = vector.load %arg7[%c0_4, %c0_5] : memref<1x128xf32, #tpu.memory_space<vmem>>, vector<1x128xf32>
    %c0_6 = arith.constant 0 : index
    %c0_7 = arith.constant 0 : index
    %6 = vector.load %arg8[%c0_6, %c0_7] : memref<1x128xf32, #tpu.memory_space<vmem>>, vector<1x128xf32>
    %c0_8 = arith.constant 0 : index
    %c0_9 = arith.constant 0 : index
    %c0_10 = arith.constant 0 : index
    %7 = vector.load %arg3[%c0_8, %c0_9, %c0_10] : memref<1x1x256xf32, #tpu.memory_space<vmem>>, vector<1x1x128xf32>
    %8 = vector.shape_cast %7 : vector<1x1x128xf32> to vector<1x128xf32>
    %cst = arith.constant 1.000000e-03 : f32
    %9 = vector.broadcast %cst : f32 to vector<1x128xf32>
    %10 = arith.cmpf oge, %8, %9 : vector<1x128xf32>
    %cst_11 = arith.constant 1.000000e+06 : f32
    %11 = vector.broadcast %cst_11 : f32 to vector<1x128xf32>
    %12 = arith.select %10, %8, %11 : vector<1x128xi1>, vector<1x128xf32>
    %13 = vector.broadcast %12 : vector<1x128xf32> to vector<16x128xf32>
    %14 = arith.subf %3, %13 : vector<16x128xf32>
    %15 = arith.mulf %14, %14 : vector<16x128xf32>
    %16 = arith.minimumf %4, %15 : vector<16x128xf32>
    %cst_12 = arith.constant dense<0x7F800000> : vector<128xf32>
    %17 = vector.multi_reduction <minimumf>, %15, %cst_12 [0] : vector<16x128xf32> to vector<128xf32>
    %18 = vector.shape_cast %17 : vector<128xf32> to vector<1x128xf32>
    %cst_13 = arith.constant 0.000000e+00 : f32
    %19 = vector.broadcast %cst_13 : f32 to vector<1x128xf32>
    %20 = arith.select %10, %18, %19 : vector<1x128xi1>, vector<1x128xf32>
    %21 = arith.addf %5, %20 : vector<1x128xf32>
    %22 = arith.extui %10 : vector<1x128xi1> to vector<1x128xi32>
    %23 = arith.sitofp %22 : vector<1x128xi32> to vector<1x128xf32>
    %24 = arith.addf %6, %23 : vector<1x128xf32>
    %c0_14 = arith.constant 0 : index
    %c0_15 = arith.constant 0 : index
    %c128 = arith.constant 128 : index
    %25 = vector.load %arg3[%c0_14, %c0_15, %c128] : memref<1x1x256xf32, #tpu.memory_space<vmem>>, vector<1x1x128xf32>
    %26 = vector.shape_cast %25 : vector<1x1x128xf32> to vector<1x128xf32>
    %cst_16 = arith.constant 1.000000e-03 : f32
    %27 = vector.broadcast %cst_16 : f32 to vector<1x128xf32>
    %28 = arith.cmpf oge, %26, %27 : vector<1x128xf32>
    %cst_17 = arith.constant 1.000000e+06 : f32
    %29 = vector.broadcast %cst_17 : f32 to vector<1x128xf32>
    %30 = arith.select %28, %26, %29 : vector<1x128xi1>, vector<1x128xf32>
    %31 = vector.broadcast %30 : vector<1x128xf32> to vector<16x128xf32>
    %32 = arith.subf %3, %31 : vector<16x128xf32>
    %33 = arith.mulf %32, %32 : vector<16x128xf32>
    %34 = arith.minimumf %16, %33 : vector<16x128xf32>
    %cst_18 = arith.constant dense<0x7F800000> : vector<128xf32>
    %35 = vector.multi_reduction <minimumf>, %33, %cst_18 [0] : vector<16x128xf32> to vector<128xf32>
    %36 = vector.shape_cast %35 : vector<128xf32> to vector<1x128xf32>
    %cst_19 = arith.constant 0.000000e+00 : f32
    %37 = vector.broadcast %cst_19 : f32 to vector<1x128xf32>
    %38 = arith.select %28, %36, %37 : vector<1x128xi1>, vector<1x128xf32>
    %39 = arith.addf %21, %38 : vector<1x128xf32>
    %40 = arith.extui %28 : vector<1x128xi1> to vector<1x128xi32>
    %41 = arith.sitofp %40 : vector<1x128xi32> to vector<1x128xf32>
    %42 = arith.addf %24, %41 : vector<1x128xf32>
    %c0_20 = arith.constant 0 : index
    %c0_21 = arith.constant 0 : index
    %43 = vector.load %arg6[%c0_20, %c0_21] : memref<16x128xf32, #tpu.memory_space<vmem>>, vector<16x128xf32>
    tpu.vector_store %arg6[%c0_20, %c0_21], %34 {strides = array<i32>} : memref<16x128xf32, #tpu.memory_space<vmem>>, vector<16x128xf32>,
    %c0_22 = arith.constant 0 : index
    %c0_23 = arith.constant 0 : index
    %44 = vector.load %arg7[%c0_22, %c0_23] : memref<1x128xf32, #tpu.memory_space<vmem>>, vector<1x128xf32>
    tpu.vector_store %arg7[%c0_22, %c0_23], %39 {strides = array<i32>} : memref<1x128xf32, #tpu.memory_space<vmem>>, vector<1x128xf32>,
    %c0_24 = arith.constant 0 : index
    %c0_25 = arith.constant 0 : index
    %45 = vector.load %arg8[%c0_24, %c0_25] : memref<1x128xf32, #tpu.memory_space<vmem>>, vector<1x128xf32>
    tpu.vector_store %arg8[%c0_24, %c0_25], %42 {strides = array<i32>} : memref<1x128xf32, #tpu.memory_space<vmem>>, vector<1x128xf32>,
    %c0_i32_26 = arith.constant 0 : i32
    %46 = arith.cmpi eq, %arg1, %c0_i32_26 : i32
    %47 = arith.extui %46 : i1 to i32
    %c0_i32_27 = arith.constant 0 : i32
    %48 = arith.cmpi ne, %47, %c0_i32_27 : i32
    scf.if %48 {
      %c0_28 = arith.constant 0 : index
      %c0_29 = arith.constant 0 : index
      %49 = vector.load %arg6[%c0_28, %c0_29] : memref<16x128xf32, #tpu.memory_space<vmem>>, vector<16x128xf32>
      %cst_30 = arith.constant dense<0x7F800000> : vector<16xf32>
      %50 = vector.multi_reduction <minimumf>, %49, %cst_30 [1] : vector<16x128xf32> to vector<16xf32>
      %51 = vector.shape_cast %50 : vector<16xf32> to vector<16x1xf32>
      %52 = tpu.iota {dimensions = array<i32: 0>} : vector<16x1xi32>
      %c16_i32 = arith.constant 16 : i32
      %53 = vector.broadcast %c16_i32 : i32 to vector<16x1xi32>
      %54 = arith.cmpi slt, %52, %53 : vector<16x1xi32>
      %cst_31 = arith.constant 0.000000e+00 : f32
      %55 = vector.broadcast %cst_31 : f32 to vector<16x1xf32>
      %56 = arith.select %54, %51, %55 : vector<16x1xi1>, vector<16x1xf32>
      %cst_32 = arith.constant dense<0.000000e+00> : vector<1xf32>
      %57 = vector.multi_reduction <add>, %56, %cst_32 [0] : vector<16x1xf32> to vector<1xf32>
      %58 = vector.shape_cast %57 : vector<1xf32> to vector<1x1xf32>
      %cst_33 = arith.constant 1.600000e+01 : f32
      %59 = vector.broadcast %cst_33 : f32 to vector<1x1xf32>
      %60 = arith.divf %58, %59 : vector<1x1xf32>
      %c0_34 = arith.constant 0 : index
      %c0_35 = arith.constant 0 : index
      %61 = vector.load %arg7[%c0_34, %c0_35] : memref<1x128xf32, #tpu.memory_space<vmem>>, vector<1x128xf32>
      %cst_36 = arith.constant dense<0.000000e+00> : vector<1xf32>
      %62 = vector.multi_reduction <add>, %61, %cst_36 [1] : vector<1x128xf32> to vector<1xf32>
      %63 = vector.shape_cast %62 : vector<1xf32> to vector<1x1xf32>
      %c0_37 = arith.constant 0 : index
      %c0_38 = arith.constant 0 : index
      %64 = vector.load %arg8[%c0_37, %c0_38] : memref<1x128xf32, #tpu.memory_space<vmem>>, vector<1x128xf32>
      %cst_39 = arith.constant dense<0.000000e+00> : vector<1xf32>
      %65 = vector.multi_reduction <add>, %64, %cst_39 [1] : vector<1x128xf32> to vector<1xf32>
      %66 = vector.shape_cast %65 : vector<1xf32> to vector<1x1xf32>
      %cst_40 = arith.constant 1.000000e+00 : f32
      %67 = vector.broadcast %cst_40 : f32 to vector<1x1xf32>
      %68 = arith.maximumf %66, %67 : vector<1x1xf32>
      %69 = arith.divf %63, %68 : vector<1x1xf32>
      %70 = arith.addf %60, %69 : vector<1x1xf32>
      %c0_41 = arith.constant 0 : index
      %c0_42 = arith.constant 0 : index
      %c0_43 = arith.constant 0 : index
      %71 = vector.load %arg4[%c0_41, %c0_42, %c0_43] : memref<1x1x1xf32, #tpu.memory_space<vmem>>, vector<1x1x1xf32>
      %72 = vector.shape_cast %71 : vector<1x1x1xf32> to vector<1x1xf32>
      %73 = vector.shape_cast %70 : vector<1x1xf32> to vector<1x1x1xf32>
      tpu.vector_store %arg4[%c0_41, %c0_42, %c0_43], %73 {strides = array<i32>} : memref<1x1x1xf32, #tpu.memory_space<vmem>>, vector<1x1x1xf32>,
    } else {
    }
    return
  }
  func.func @transform_0(%arg0: i32, %arg1: i32) -> (i32, i32, i32) {
    %c0_i32 = arith.constant 0 : i32
    %c0_i32_0 = arith.constant 0 : i32
    %c0_i32_1 = arith.constant 0 : i32
    return %arg0, %c0_i32, %c0_i32_0 : i32, i32, i32
  }
  func.func @transform_1(%arg0: i32, %arg1: i32) -> (i32, i32, i32) {
    %c0_i32 = arith.constant 0 : i32
    %c0_i32_0 = arith.constant 0 : i32
    return %arg0, %c0_i32, %arg1 : i32, i32, i32
  }
  func.func @transform_2(%arg0: i32, %arg1: i32) -> (i32, i32, i32) {
    %c0_i32 = arith.constant 0 : i32
    %c0_i32_0 = arith.constant 0 : i32
    %c0_i32_1 = arith.constant 0 : i32
    return %arg0, %c0_i32, %c0_i32_0 : i32, i32, i32
  }
}

</mosaic_0001>

<bundles_post_ra>
// kernel: tpu_custom_call.1
= control target key start
LH: loop header
LB: loop body
LE: loop exit
PB: predicated region body
PF: predicated region fallthrough
CT: control target
= control target key end

     0   :  { %s464_s9 = smov 0   ;;  %s466_s10 = smov 0   ;;  %s513_s0 = inlined_call_operand.vmem [shape: f32[2,16,1], index: 0, kind: input, shape index: {}]   ;;  %s514_s1 = inlined_call_operand.vmem [shape: f32[2,1,256], index: 1, kind: input, shape index: {}]   ;;  %s515_s2 = inlined_call_operand.vmem [shape: f32[2,1,1], index: 2, kind: output, shape index: {}]  }
   0x1   :  { %s468_s11 = smov 0  }
   0x2 LB: > { %s24_s12 = sadd.s32 1, %s441_s10  ;;  %p385_p0 = scmp.ge.s32.totalorder %s445_s11, 1  ;;  %s445_s11 = sphi %s468_s11, %s12_s11   ;;  %s441_s10 = sphi %s466_s10, %s517_s10   ;;  %s437_s9 = sphi %s464_s9, %s516_s9  }
   0x3   : > { %p26_p1 = scmp.ge.s32.totalorder %s24_s12, 2  ;;  %p140_p2 = scmp.lt.s32.totalorder %s445_s11, 3 }
   0x5   : > { %s519_s12 = smov (%p26_p1, %s24_s12), 0  ;;  %p141_p3 = pnand %p385_p0, %p140_p2 }
   0x6   : > { %p168_p4 = scmp.lt.s32.totalorder (!%p141_p3), %s437_s9, 1  ;;  %v447_v0 = vmov (!%p141_p3), 0   ;;  %v448_v1 = vmov (!%p141_p3), 0.0   ;;  %vm297_vm2 = vcmask (!%p141_p3), 1040384   ;;  %v217_v13 = vlaneseq (!%p141_p3) }
   0x7   : > { %144 = sbr.rel (%p141_p3) target bundleno = 329 (0x149), region = 28  ;;  %420 = vset.pattern.permute.xlu0 (!%p141_p3), %v447_v0  ;;  %205 = vst [vmem:[#allocation4] sm:$0x1] (!%p141_p3), %v448_v1  ;;  %206 = vst [vmem:[#allocation5] sm:$0x1] (!%p141_p3), %v448_v1  ;;  %vm309_vm3 = vcmask (!%p141_p3), 0  }
   0x8   : > { %v218_v14 = vshrl.u32 (!%p141_p3), %v217_v13, 7 }
   0xa   : > { %v219_v15 = vsub.s32 (!%p141_p3), 0, %v218_v14 }
   0xe   : > { %s521_s9 = smov (!%p168_p4, %s437_s9), 1  ;;  %v212_v6 = vld [vmem:[#allocation5] sm:$0x1]  ;;  %v211_v46 = vld [vmem:[#allocation4] sm:$0x1] }
   0xf   : > { %s393_s13 = sshll.u32 %s521_s9, 4  ;;  %s388_s14 = sshll.u32 %s521_s9, 1 }
  0x10   : > { %s172_s17 = scalar_lea.vmem %s513_s0, %s393_s13  ;;  %s180_s20 = scalar_lea.vmem %s514_s1, %s388_s14 }
  0x11   : > { %v189_v2 = vld [vmem:[%s172_s17] sm:$0xff]  ;;  %v190_v5 = vld [vmem:[%s172_s17 + $0x8] sm:$0xff]  ;;  %s184_s23 = scalar_lea.vmem %s515_s2, %s521_s9 }
  0x12   : > { %v213_v3 = vld [vmem:[%s180_s20] sm:$0x1]  ;;  %193 = vperm.xlu0 %420, %v189_v2   ;;  %v240_v4 = vld [vmem:[%s180_s20 + $0x1] sm:$0x1] }
  0x13   : > { %vm214_vm0 = vcmp.ge.f32.partialorder %v213_v3, 0.001  ;;  %vm241_vm1 = vcmp.ge.f32.partialorder %v240_v4, 0.001 }
  0x14   : > { %v389_v7 = vsel %vm214_vm0, 1.0, %v448_v1  ;;  %v390_v9 = vsel %vm241_vm1, 1.0, %v448_v1  ;;  %v215_v16 = vsel %vm214_vm0, %v213_v3, 1000000.0  ;;  %v242_v17 = vsel %vm241_vm1, %v240_v4, 1000000.0 }
  0x15   : > { %v239_v8 = vadd.f32 %v389_v7, %v212_v6  ;;  %v220_v18 = vrot.slane %v215_v16, %v219_v15  ;;  %v247_v19 = vrot.slane %v242_v17, %v219_v15 }
  0x16   : > { %198 = vperm.xlu0 %420, %v190_v5  }
  0x17   : > { %v266_v10 = vadd.f32 %v390_v9, %v239_v8 }
  0x19   : > { %270 = vst [vmem:[#allocation5] sm:$0x1] %v266_v10 }
  0x20   : > { %v301_v11 = vld [vmem:[#allocation5] sm:$0x1] }
  0x21   : > { %v302_v12 = vsel %vm297_vm2, %v301_v11, 0.0 }
  0x35   : > { %303 = vadd.xlane.f32.xlu0 %v302_v12 }
  0x91   : > { %v194_v20 = vpop.permute.xlu0 %193 }
  0x92   : > { %v222_v21 = vsub.f32 %v194_v20, %v220_v18  ;;  %v249_v22 = vsub.f32 %v194_v20, %v247_v19 }
  0x94   : > { %v224_v23 = vmul.f32 %v222_v21, %v222_v21  ;;  %v251_v28 = vmul.f32 %v249_v22, %v249_v22 }
  0x95   : > { %v199_v24 = vpop.permute.xlu0 %198 }
  0x96   : > { %v223_v25 = vsub.f32 %v199_v24, %v220_v18  ;;  %v250_v26 = vsub.f32 %v199_v24, %v247_v19  ;;  %v226_v27 = vmin.f32 %v224_v23, 1e+12 }
  0x98   : > { %v225_v29 = vmul.f32 %v223_v25, %v223_v25  ;;  %v252_v30 = vmul.f32 %v250_v26, %v250_v26  ;;  %v253_v31 = vmin.f32 %v226_v27, %v251_v28 }
  0x9a   : > { %v228_v32 = vmin.f32 %v224_v23, %v225_v29  ;;  %276 = vmin.xlane.f32.xlu1 %v253_v31  ;;  %v255_v33 = vmin.f32 %v251_v28, %v252_v30  ;;  %v227_v34 = vmin.f32 %v225_v29, 1e+12 }
  0x9c   : > { %v229_v35 = vrot.slane %v228_v32, 4  ;;  %v256_v36 = vrot.slane %v255_v33, 4  ;;  %v254_v37 = vmin.f32 %v227_v34, %v252_v30 }
  0x9e   : > { %v230_v38 = vmin.f32 %v228_v32, %v229_v35  ;;  %v257_v39 = vmin.f32 %v255_v33, %v256_v36  ;;  %278 = vmin.xlane.f32.xlu1 %v254_v37 }
  0xa0   : > { %v231_v40 = vrot.slane %v230_v38, 2  ;;  %v258_v41 = vrot.slane %v257_v39, 2 }
  0xa2   : > { %v232_v42 = vmin.f32 %v230_v38, %v231_v40  ;;  %v259_v43 = vmin.f32 %v257_v39, %v258_v41 }
  0xa4   : > { %v233_v44 = vrot.slane %v232_v42, 1  ;;  %v260_v45 = vrot.slane %v259_v43, 1 }
  0xa6   : > { %v234_v47 = vmin.f32 %v232_v42, %v233_v44  ;;  %v261_v48 = vmin.f32 %v259_v43, %v260_v45 }
  0xa8   : > { %v235_v49 = vsel %vm214_vm0, %v234_v47, 0.0  ;;  %v262_v51 = vsel %vm241_vm1, %v261_v48, 0.0 }
  0xa9   : > { %v236_v50 = vadd.f32 %v235_v49, %v211_v46 }
  0xab   : > { %v263_v52 = vadd.f32 %v262_v51, %v236_v50 }
  0xad   : > { %269 = vst [vmem:[#allocation4] sm:$0x1] %v263_v52 }
  0xb4   : > { %v296_v53 = vld [vmem:[#allocation4] sm:$0x1] }
  0xb5   : > { %v298_v54 = vsel %vm297_vm2, %v296_v53, 0.0 }
  0xb6   : > { %299 = vadd.xlane.f32.xlu1 %v298_v54 }
  0xc2   : > { %v304_v60 = vpop.xlane.xlu0 %303 }
  0xc3   : > { %v305_v61 = vmax.f32 %v304_v60, 1.0 }
  0xc5   : > { %421 = vrcp.f32 %v305_v61 }
  0xcf   : > { %v422_v2 = vpop.eup %421 }
 0x127   : > { %v277_v55 = vpop.xlane.xlu1 %276 }
 0x12b   : > { %v279_v56 = vpop.xlane.xlu1 %278 }
 0x12c   : > { %v287_v57 = vadd.f32 %v279_v56, %v277_v55 }
 0x12e   : > { %v288_v58 = vrot.slane %v287_v57, 4 }
 0x130   : > { %v289_v59 = vadd.f32 %v288_v58, %v287_v57 }
 0x132   : > { %v290_v62 = vrot.slane %v289_v59, 2 }
 0x134   : > { %v291_v63 = vadd.f32 %v290_v62, %v289_v59 }
 0x136   : > { %v292_v0 = vrot.slane %v291_v63, 1 }
 0x138   : > { %v293_v1 = vadd.f32 %v292_v0, %v291_v63 }
 0x13a   : > { %v295_v4 = vmul.f32 0.0625, %v293_v1 }
 0x143   : > { %v300_v3 = vpop.xlane.xlu1 %299 }
 0x144   : > { %v307_v5 = vmul.f32 %v422_v2, %v300_v3 }
 0x146   : > { %v308_v6 = vadd.f32 %v307_v5, %v295_v4 }
 0x148   : > { %310 = vst.msk [vmem:[%s184_s23] sm:$0x1] %vm309_vm3, %v308_v6 }
 0x149 PF: > { %s12_s11 = sadd.s32 1, %s445_s11   ;;  %s516_s9 = smov %s441_s10 }
 0x14a   : > { %p9_p5 = scmp.ge.s32.totalorder %s12_s11, 4   ;;  %s517_s10 = smov %s519_s12 }
 0x14c   :  { %11 = sbr.rel (!%p9_p5) target bundleno = 2 (0x2), region = 69 }

</bundles_post_ra>
